<compile_context>
chip_gen: v6e
topology: v6e:2x2x1
jax: 0.10.0
libtpu: 0.0.40
codegen_flags: <defaults>
</compile_context>

<pallas_src>
import functools

import jax
import jax.numpy as jnp
from jax.experimental import pallas as pl
from jax.experimental.pallas import tpu as pltpu


_VMEM_TILE_BUDGET = 8 * 1024 * 1024   # double-buffered in+out activation tiles
_MIN_PIXELS_PER_STEP = 16 * 1024      # keep per-step DMA >> ~0.35us fixed overhead
_MIN_GRID_STEPS = 4                   # enough steps to feed both v7x TensorCores
_VPU_CHANNEL_LIMIT = 128              # unrolled VPU MACs when C_in*C_out <= this


def _round_up(x, m):
    return ((x + m - 1) // m) * m


def _bytes_per_pixel(c_in, c_out):
    # Pessimistic accounting: 4-byte words, channel dim sublane-padded to 8
    # rows, double-buffered input + output tiles (bf16 packs 2 rows/sublane,
    # so the same formula upper-bounds it too).
    return 2 * (_round_up(c_in, 8) + _round_up(c_out, 8)) * 4


def _choose_tiles(n, hw, c_in, c_out):
    """Pick (b_tile, hw_tile) for the batch-blocked (VPU) kernel."""
    max_pixels = max(128, _VMEM_TILE_BUDGET // _bytes_per_pixel(c_in, c_out))

    if hw >= max_pixels:
        b_tile = 1
        hw_tile = max(128, (min(hw, max_pixels) // 128) * 128)
    else:
        hw_tile = hw                       # full spatial extent (always legal)
        b_tile = max(1, min(n, max_pixels // max(hw, 1)))

    # Keep a few parallel grid steps (v7x dual-TC), but never let a step's
    # DMA shrink below ~16K pixels (amortizes the fixed per-step overhead).
    def n_steps(bt, ht):
        return pl.cdiv(n, bt) * pl.cdiv(hw, ht)

    while n_steps(b_tile, hw_tile) < _MIN_GRID_STEPS:
        if b_tile > 1 and ((b_tile + 1) // 2) * hw_tile >= _MIN_PIXELS_PER_STEP:
            b_tile = (b_tile + 1) // 2
        elif hw_tile % 256 == 0 and b_tile * (hw_tile // 2) >= _MIN_PIXELS_PER_STEP:
            hw_tile //= 2
        else:
            break
    return b_tile, hw_tile


def _choose_hw_tile_mxu(n, hw, c_in, c_out):
    """Pick hw_tile for the per-image (MXU) fallback kernel."""
    max_pixels = max(128, _VMEM_TILE_BUDGET // _bytes_per_pixel(c_in, c_out))
    if hw <= max_pixels:
        return hw
    hw_tile = max(128, (min(hw, max_pixels) // 128) * 128)
    while (n * pl.cdiv(hw, hw_tile) < _MIN_GRID_STEPS
           and hw_tile % 256 == 0
           and hw_tile // 2 >= _MIN_PIXELS_PER_STEP):
        hw_tile //= 2
    return hw_tile


def _pointwise_conv_vpu_kernel(x_ref, w_ref, b_ref, o_ref):
    # x_ref: (b_tile, C_in, HW_TILE)   VMEM, lane-dense on the pixel axis
    # w_ref: (C_out, C_in)             SMEM scalar table (resident)
    # b_ref: (C_out,)                  SMEM scalar table (resident)
    # o_ref: (b_tile, C_out, HW_TILE)  VMEM, lane-dense
    c_in = x_ref.shape[1]
    c_out = o_ref.shape[1]
    for o in range(c_out):               # static unroll: C_out*C_in VPU FMAs
        acc = x_ref[:, 0, :].astype(jnp.float32) * w_ref[o, 0]
        for c in range(1, c_in):
            acc = acc + x_ref[:, c, :].astype(jnp.float32) * w_ref[o, c]
        o_ref[:, o, :] = (acc + b_ref[o]).astype(o_ref.dtype)


def _pointwise_conv_mxu_kernel(x_ref, w_ref, b_ref, o_ref):
    # x_ref: (C_in, HW_TILE), w_ref: (C_out, C_in), b_ref: (C_out, 1) -- VMEM
    acc = jnp.dot(w_ref[...], x_ref[...], preferred_element_type=jnp.float32)
    o_ref[...] = (acc + b_ref[...].astype(jnp.float32)).astype(o_ref.dtype)


@functools.partial(jax.jit, static_argnames=("b_tile", "hw_tile", "buffers"))
def out_conv(x_nchw, weight, bias, *, b_tile=None, hw_tile=None, buffers=2):
    """1x1 Conv2d forward (== nn.Conv2d(in_dim, out_dim, kernel_size=1)).

    x_nchw : (N, C_in, H, W)
    weight : (C_out, C_in, 1, 1)   -- PyTorch layout
    bias   : (C_out,)
    returns: (N, C_out, H, W), same dtype as x_nchw
    """
    n, c_in, h, w = x_nchw.shape
    c_out = weight.shape[0]
    hw = h * w

    # Free reshapes only (no transpose): NCHW ordering kept end to end.
    x_flat = x_nchw.reshape(n, c_in, hw)          # (N, C_in, H*W)
    w_mat = weight.reshape(c_out, c_in)           # (C_out, C_in)

    cost = pl.CostEstimate(
        flops=2 * n * hw * c_in * c_out,
        transcendentals=0,
        bytes_accessed=n * hw * (c_in + c_out) * x_nchw.dtype.itemsize
        + (c_in * c_out + c_out) * 4,
    )

    x_spec_kwargs = {}
    if buffers and buffers > 2:
        # Optional deeper activation pipeline (one extra tile of VMEM).
        x_spec_kwargs["pipeline_mode"] = pl.Buffered(buffers)

    if c_in * c_out <= _VPU_CHANNEL_LIMIT:
        # ---- small-channel path: batch-blocked, unrolled VPU MACs ----------
        bt_auto, ht_auto = _choose_tiles(n, hw, c_in, c_out)
        bt = b_tile if b_tile is not None else bt_auto
        ht = hw_tile if hw_tile is not None else ht_auto

        grid = (pl.cdiv(n, bt), pl.cdiv(hw, ht))
        y_flat = pl.pallas_call(
            _pointwise_conv_vpu_kernel,
            out_shape=jax.ShapeDtypeStruct((n, c_out, hw), x_nchw.dtype),
            grid_spec=pltpu.PrefetchScalarGridSpec(
                num_scalar_prefetch=0,
                grid=grid,
                in_specs=[
                    pl.BlockSpec((bt, c_in, ht), lambda b, j: (b, 0, j),
                                 **x_spec_kwargs),
                    # 1x1 weight + bias as resident scalar tables in SMEM.
                    pl.BlockSpec(memory_space=pltpu.MemorySpace.SMEM),
                    pl.BlockSpec(memory_space=pltpu.MemorySpace.SMEM),
                ],
                out_specs=pl.BlockSpec((bt, c_out, ht), lambda b, j: (b, 0, j)),
            ),
            compiler_params=pltpu.CompilerParams(
                dimension_semantics=("parallel", "parallel"),
            ),
            cost_estimate=cost,
        )(x_flat, w_mat.astype(jnp.float32), bias.astype(jnp.float32))
    else:
        # ---- large-channel fallback: per-image MXU matmul ------------------
        ht = hw_tile if hw_tile is not None else _choose_hw_tile_mxu(
            n, hw, c_in, c_out)
        grid = (n, pl.cdiv(hw, ht))
        y_flat = pl.pallas_call(
            _pointwise_conv_mxu_kernel,
            out_shape=jax.ShapeDtypeStruct((n, c_out, hw), x_nchw.dtype),
            grid_spec=pltpu.PrefetchScalarGridSpec(
                num_scalar_prefetch=0,
                grid=grid,
                in_specs=[
                    # Batch dim squeezed; kernel sees (C_in, ht).
                    pl.BlockSpec((None, c_in, ht), lambda b, j: (b, 0, j),
                                 **x_spec_kwargs),
                    # Weight/bias: same block every step -> resident in VMEM.
                    pl.BlockSpec((c_out, c_in), lambda b, j: (0, 0)),
                    pl.BlockSpec((c_out, 1), lambda b, j: (0, 0)),
                ],
                out_specs=pl.BlockSpec((None, c_out, ht), lambda b, j: (b, 0, j)),
            ),
            compiler_params=pltpu.CompilerParams(
                dimension_semantics=("parallel", "parallel"),
            ),
            cost_estimate=cost,
        )(x_flat, w_mat, bias.reshape(c_out, 1).astype(jnp.float32))

    return y_flat.reshape(n, c_out, h, w)


def _reference(x, weight, bias):
    c_out, c_in = weight.shape[0], weight.shape[1]
    y = jnp.einsum("nchw,oc->nohw", x.astype(jnp.float32),
                   weight.reshape(c_out, c_in).astype(jnp.float32))
    y = y + bias.astype(jnp.float32)[None, :, None, None]
    return y.astype(x.dtype)


if __name__ == "__main__":
    root = jax.random.PRNGKey(0)

    cases = [
        # (N, C_in, C_out, H, W, kwargs)
        (2, 4, 3, 16, 16, {}),                            # outConv demo (VPU path)
        (3, 5, 2, 7, 9, {}),                              # odd channels / non-128 lanes
        (1, 4, 3, 16, 20, dict(b_tile=1, hw_tile=128)),   # spatial tiling + boundary block
        (2, 24, 8, 8, 16, {}),                            # large-channel MXU fallback path
    ]

    for idx, (n, c_in, c_out, hh, ww, kwargs) in enumerate(cases):
        kx, kw, kb = jax.random.split(jax.random.fold_in(root, idx), 3)
        x = jax.random.normal(kx, (n, c_in, hh, ww), dtype=jnp.float32)
        weight = jax.random.normal(kw, (c_out, c_in, 1, 1), dtype=jnp.float32) * 0.1
        bias = jax.random.normal(kb, (c_out,), dtype=jnp.float32) * 0.1

        y = jax.block_until_ready(out_conv(x, weight, bias, **kwargs))
        y_ref = _reference(x, weight, bias)
        assert y.shape == (n, c_out, hh, ww)
        assert jnp.allclose(y, y_ref, atol=1e-4, rtol=1e-4), f"case {idx} mismatch"

    print("KERNEL_OK")
</pallas_src>

<mosaic_0001>
module attributes {stable_mosaic.version = 11 : i64} {
  func.func @_pointwise_conv_vpu_kernel(%arg0: i32, %arg1: i32, %arg2: memref<2x4x256xf32, #tpu.memory_space<vmem>>, %arg3: memref<3x4xf32, #tpu.memory_space<smem>>, %arg4: memref<3xf32, #tpu.memory_space<smem>>, %arg5: memref<2x3x256xf32, #tpu.memory_space<vmem>>) attributes {dimension_semantics = [#tpu.dimension_semantics<parallel>, #tpu.dimension_semantics<parallel>], iteration_bounds = array<i64: 1, 1>, scalar_prefetch = 0 : i64, scratch_operands = 0 : i64, tpu.core_type = #tpu.core_type<tc>, window_params = [{transform_indices = @transform_0, window_bounds = array<i64: 2, 4, 256>}, {transform_indices = @transform_1, window_bounds = array<i64: 3, 4>}, {transform_indices = @transform_2, window_bounds = array<i64: 3>}, {transform_indices = @transform_3, window_bounds = array<i64: 2, 3, 256>}]} {
    %c0 = arith.constant 0 : index
    %c0_0 = arith.constant 0 : index
    %c0_1 = arith.constant 0 : index
    %0 = vector.load %arg2[%c0, %c0_0, %c0_1] : memref<2x4x256xf32, #tpu.memory_space<vmem>>, vector<2x1x256xf32>
    %1 = vector.shape_cast %0 : vector<2x1x256xf32> to vector<2x256xf32>
    %c0_2 = arith.constant 0 : index
    %c0_3 = arith.constant 0 : index
    %2 = memref.load %arg3[%c0_2, %c0_3] : memref<3x4xf32, #tpu.memory_space<smem>>
    %3 = vector.broadcast %2 : f32 to vector<2x256xf32>
    %4 = arith.mulf %1, %3 : vector<2x256xf32>
    %c0_4 = arith.constant 0 : index
    %c1 = arith.constant 1 : index
    %c0_5 = arith.constant 0 : index
    %5 = vector.load %arg2[%c0_4, %c1, %c0_5] : memref<2x4x256xf32, #tpu.memory_space<vmem>>, vector<2x1x256xf32>
    %6 = vector.shape_cast %5 : vector<2x1x256xf32> to vector<2x256xf32>
    %c0_6 = arith.constant 0 : index
    %c1_7 = arith.constant 1 : index
    %7 = memref.load %arg3[%c0_6, %c1_7] : memref<3x4xf32, #tpu.memory_space<smem>>
    %8 = vector.broadcast %7 : f32 to vector<2x256xf32>
    %9 = arith.mulf %6, %8 : vector<2x256xf32>
    %10 = arith.addf %4, %9 : vector<2x256xf32>
    %c0_8 = arith.constant 0 : index
    %c2 = arith.constant 2 : index
    %c0_9 = arith.constant 0 : index
    %11 = vector.load %arg2[%c0_8, %c2, %c0_9] : memref<2x4x256xf32, #tpu.memory_space<vmem>>, vector<2x1x256xf32>
    %12 = vector.shape_cast %11 : vector<2x1x256xf32> to vector<2x256xf32>
    %c0_10 = arith.constant 0 : index
    %c2_11 = arith.constant 2 : index
    %13 = memref.load %arg3[%c0_10, %c2_11] : memref<3x4xf32, #tpu.memory_space<smem>>
    %14 = vector.broadcast %13 : f32 to vector<2x256xf32>
    %15 = arith.mulf %12, %14 : vector<2x256xf32>
    %16 = arith.addf %10, %15 : vector<2x256xf32>
    %c0_12 = arith.constant 0 : index
    %c3 = arith.constant 3 : index
    %c0_13 = arith.constant 0 : index
    %17 = vector.load %arg2[%c0_12, %c3, %c0_13] : memref<2x4x256xf32, #tpu.memory_space<vmem>>, vector<2x1x256xf32>
    %18 = vector.shape_cast %17 : vector<2x1x256xf32> to vector<2x256xf32>
    %c0_14 = arith.constant 0 : index
    %c3_15 = arith.constant 3 : index
    %19 = memref.load %arg3[%c0_14, %c3_15] : memref<3x4xf32, #tpu.memory_space<smem>>
    %20 = vector.broadcast %19 : f32 to vector<2x256xf32>
    %21 = arith.mulf %18, %20 : vector<2x256xf32>
    %22 = arith.addf %16, %21 : vector<2x256xf32>
    %c0_16 = arith.constant 0 : index
    %23 = memref.load %arg4[%c0_16] : memref<3xf32, #tpu.memory_space<smem>>
    %24 = vector.broadcast %23 : f32 to vector<2x256xf32>
    %25 = arith.addf %22, %24 : vector<2x256xf32>
    %c0_17 = arith.constant 0 : index
    %c0_18 = arith.constant 0 : index
    %c0_19 = arith.constant 0 : index
    %26 = vector.load %arg5[%c0_17, %c0_18, %c0_19] : memref<2x3x256xf32, #tpu.memory_space<vmem>>, vector<2x1x256xf32>
    %27 = vector.shape_cast %26 : vector<2x1x256xf32> to vector<2x256xf32>
    %28 = vector.shape_cast %25 : vector<2x256xf32> to vector<2x1x256xf32>
    tpu.vector_store %arg5[%c0_17, %c0_18, %c0_19], %28 {strides = array<i32>} : memref<2x3x256xf32, #tpu.memory_space<vmem>>, vector<2x1x256xf32>,
    %c0_20 = arith.constant 0 : index
    %c0_21 = arith.constant 0 : index
    %c0_22 = arith.constant 0 : index
    %29 = vector.load %arg2[%c0_20, %c0_21, %c0_22] : memref<2x4x256xf32, #tpu.memory_space<vmem>>, vector<2x1x256xf32>
    %30 = vector.shape_cast %29 : vector<2x1x256xf32> to vector<2x256xf32>
    %c1_23 = arith.constant 1 : index
    %c0_24 = arith.constant 0 : index
    %31 = memref.load %arg3[%c1_23, %c0_24] : memref<3x4xf32, #tpu.memory_space<smem>>
    %32 = vector.broadcast %31 : f32 to vector<2x256xf32>
    %33 = arith.mulf %30, %32 : vector<2x256xf32>
    %c0_25 = arith.constant 0 : index
    %c1_26 = arith.constant 1 : index
    %c0_27 = arith.constant 0 : index
    %34 = vector.load %arg2[%c0_25, %c1_26, %c0_27] : memref<2x4x256xf32, #tpu.memory_space<vmem>>, vector<2x1x256xf32>
    %35 = vector.shape_cast %34 : vector<2x1x256xf32> to vector<2x256xf32>
    %c1_28 = arith.constant 1 : index
    %c1_29 = arith.constant 1 : index
    %36 = memref.load %arg3[%c1_28, %c1_29] : memref<3x4xf32, #tpu.memory_space<smem>>
    %37 = vector.broadcast %36 : f32 to vector<2x256xf32>
    %38 = arith.mulf %35, %37 : vector<2x256xf32>
    %39 = arith.addf %33, %38 : vector<2x256xf32>
    %c0_30 = arith.constant 0 : index
    %c2_31 = arith.constant 2 : index
    %c0_32 = arith.constant 0 : index
    %40 = vector.load %arg2[%c0_30, %c2_31, %c0_32] : memref<2x4x256xf32, #tpu.memory_space<vmem>>, vector<2x1x256xf32>
    %41 = vector.shape_cast %40 : vector<2x1x256xf32> to vector<2x256xf32>
    %c1_33 = arith.constant 1 : index
    %c2_34 = arith.constant 2 : index
    %42 = memref.load %arg3[%c1_33, %c2_34] : memref<3x4xf32, #tpu.memory_space<smem>>
    %43 = vector.broadcast %42 : f32 to vector<2x256xf32>
    %44 = arith.mulf %41, %43 : vector<2x256xf32>
    %45 = arith.addf %39, %44 : vector<2x256xf32>
    %c0_35 = arith.constant 0 : index
    %c3_36 = arith.constant 3 : index
    %c0_37 = arith.constant 0 : index
    %46 = vector.load %arg2[%c0_35, %c3_36, %c0_37] : memref<2x4x256xf32, #tpu.memory_space<vmem>>, vector<2x1x256xf32>
    %47 = vector.shape_cast %46 : vector<2x1x256xf32> to vector<2x256xf32>
    %c1_38 = arith.constant 1 : index
    %c3_39 = arith.constant 3 : index
    %48 = memref.load %arg3[%c1_38, %c3_39] : memref<3x4xf32, #tpu.memory_space<smem>>
    %49 = vector.broadcast %48 : f32 to vector<2x256xf32>
    %50 = arith.mulf %47, %49 : vector<2x256xf32>
    %51 = arith.addf %45, %50 : vector<2x256xf32>
    %c1_40 = arith.constant 1 : index
    %52 = memref.load %arg4[%c1_40] : memref<3xf32, #tpu.memory_space<smem>>
    %53 = vector.broadcast %52 : f32 to vector<2x256xf32>
    %54 = arith.addf %51, %53 : vector<2x256xf32>
    %c0_41 = arith.constant 0 : index
    %c1_42 = arith.constant 1 : index
    %c0_43 = arith.constant 0 : index
    %55 = vector.load %arg5[%c0_41, %c1_42, %c0_43] : memref<2x3x256xf32, #tpu.memory_space<vmem>>, vector<2x1x256xf32>
    %56 = vector.shape_cast %55 : vector<2x1x256xf32> to vector<2x256xf32>
    %57 = vector.shape_cast %54 : vector<2x256xf32> to vector<2x1x256xf32>
    tpu.vector_store %arg5[%c0_41, %c1_42, %c0_43], %57 {strides = array<i32>} : memref<2x3x256xf32, #tpu.memory_space<vmem>>, vector<2x1x256xf32>,
    %c0_44 = arith.constant 0 : index
    %c0_45 = arith.constant 0 : index
    %c0_46 = arith.constant 0 : index
    %58 = vector.load %arg2[%c0_44, %c0_45, %c0_46] : memref<2x4x256xf32, #tpu.memory_space<vmem>>, vector<2x1x256xf32>
    %59 = vector.shape_cast %58 : vector<2x1x256xf32> to vector<2x256xf32>
    %c2_47 = arith.constant 2 : index
    %c0_48 = arith.constant 0 : index
    %60 = memref.load %arg3[%c2_47, %c0_48] : memref<3x4xf32, #tpu.memory_space<smem>>
    %61 = vector.broadcast %60 : f32 to vector<2x256xf32>
    %62 = arith.mulf %59, %61 : vector<2x256xf32>
    %c0_49 = arith.constant 0 : index
    %c1_50 = arith.constant 1 : index
    %c0_51 = arith.constant 0 : index
    %63 = vector.load %arg2[%c0_49, %c1_50, %c0_51] : memref<2x4x256xf32, #tpu.memory_space<vmem>>, vector<2x1x256xf32>
    %64 = vector.shape_cast %63 : vector<2x1x256xf32> to vector<2x256xf32>
    %c2_52 = arith.constant 2 : index
    %c1_53 = arith.constant 1 : index
    %65 = memref.load %arg3[%c2_52, %c1_53] : memref<3x4xf32, #tpu.memory_space<smem>>
    %66 = vector.broadcast %65 : f32 to vector<2x256xf32>
    %67 = arith.mulf %64, %66 : vector<2x256xf32>
    %68 = arith.addf %62, %67 : vector<2x256xf32>
    %c0_54 = arith.constant 0 : index
    %c2_55 = arith.constant 2 : index
    %c0_56 = arith.constant 0 : index
    %69 = vector.load %arg2[%c0_54, %c2_55, %c0_56] : memref<2x4x256xf32, #tpu.memory_space<vmem>>, vector<2x1x256xf32>
    %70 = vector.shape_cast %69 : vector<2x1x256xf32> to vector<2x256xf32>
    %c2_57 = arith.constant 2 : index
    %c2_58 = arith.constant 2 : index
    %71 = memref.load %arg3[%c2_57, %c2_58] : memref<3x4xf32, #tpu.memory_space<smem>>
    %72 = vector.broadcast %71 : f32 to vector<2x256xf32>
    %73 = arith.mulf %70, %72 : vector<2x256xf32>
    %74 = arith.addf %68, %73 : vector<2x256xf32>
    %c0_59 = arith.constant 0 : index
    %c3_60 = arith.constant 3 : index
    %c0_61 = arith.constant 0 : index
    %75 = vector.load %arg2[%c0_59, %c3_60, %c0_61] : memref<2x4x256xf32, #tpu.memory_space<vmem>>, vector<2x1x256xf32>
    %76 = vector.shape_cast %75 : vector<2x1x256xf32> to vector<2x256xf32>
    %c2_62 = arith.constant 2 : index
    %c3_63 = arith.constant 3 : index
    %77 = memref.load %arg3[%c2_62, %c3_63] : memref<3x4xf32, #tpu.memory_space<smem>>
    %78 = vector.broadcast %77 : f32 to vector<2x256xf32>
    %79 = arith.mulf %76, %78 : vector<2x256xf32>
    %80 = arith.addf %74, %79 : vector<2x256xf32>
    %c2_64 = arith.constant 2 : index
    %81 = memref.load %arg4[%c2_64] : memref<3xf32, #tpu.memory_space<smem>>
    %82 = vector.broadcast %81 : f32 to vector<2x256xf32>
    %83 = arith.addf %80, %82 : vector<2x256xf32>
    %c0_65 = arith.constant 0 : index
    %c2_66 = arith.constant 2 : index
    %c0_67 = arith.constant 0 : index
    %84 = vector.load %arg5[%c0_65, %c2_66, %c0_67] : memref<2x3x256xf32, #tpu.memory_space<vmem>>, vector<2x1x256xf32>
    %85 = vector.shape_cast %84 : vector<2x1x256xf32> to vector<2x256xf32>
    %86 = vector.shape_cast %83 : vector<2x256xf32> to vector<2x1x256xf32>
    tpu.vector_store %arg5[%c0_65, %c2_66, %c0_67], %86 {strides = array<i32>} : memref<2x3x256xf32, #tpu.memory_space<vmem>>, vector<2x1x256xf32>,
    return
  }
  func.func @transform_0(%arg0: i32, %arg1: i32) -> (i32, i32, i32) {
    %c0_i32 = arith.constant 0 : i32
    %c0_i32_0 = arith.constant 0 : i32
    return %arg0, %c0_i32, %arg1 : i32, i32, i32
  }
  func.func @transform_1(%arg0: i32, %arg1: i32) -> (i32, i32) {
    %c0_i32 = arith.constant 0 : i32
    %c0_i32_0 = arith.constant 0 : i32
    %c0_i32_1 = arith.constant 0 : i32
    return %c0_i32, %c0_i32_0 : i32, i32
  }
  func.func @transform_2(%arg0: i32, %arg1: i32) -> i32 {
    %c0_i32 = arith.constant 0 : i32
    %c0_i32_0 = arith.constant 0 : i32
    return %c0_i32 : i32
  }
  func.func @transform_3(%arg0: i32, %arg1: i32) -> (i32, i32, i32) {
    %c0_i32 = arith.constant 0 : i32
    %c0_i32_0 = arith.constant 0 : i32
    return %arg0, %c0_i32, %arg1 : i32, i32, i32
  }
}

</mosaic_0001>

<bundles_post_ra>
// kernel: out_conv.1
= control target key start
LH: loop header
LB: loop body
LE: loop exit
PB: predicated region body
PF: predicated region fallthrough
CT: control target
= control target key end

     0   :  { %8 = vsyncpa [#allocation3], 0  ;;  %s405_s0 = inlined_call_operand.vmem [shape: f32[2,4,256], index: 0, kind: input, shape index: {}]   ;;  %s406_s1 = inlined_call_operand.vmem [shape: f32[3,4], index: 1, kind: input, shape index: {}]   ;;  %s407_s2 = inlined_call_operand.vmem [shape: f32[3], index: 2, kind: input, shape index: {}]   ;;  %s408_s3 = inlined_call_operand.vmem [shape: f32[2,3,256], index: 3, kind: output, shape index: {}]  }
   0x1   :  { %s18_s14 = sshll.u32 %s406_s1, 4  ;;  %s19_s14 = int_to_ptr.vmem [resolvable:$true] %s18_s14 }
   0x2   :  { %9 = vsyncpa [#allocation5], 0  ;;  %s28_s17 = sshll.u32 %s407_s2, 4  ;;  %s210_s18 = scalar_lea.vmem %s19_s14, 64  ;;  %s29_s17 = int_to_ptr.vmem [resolvable:$true] %s28_s17 }
   0x3   :  { %p211_p0 = scmp.ne.s32.totalorder %s19_s14, %s210_s18  ;;  %p215_p1 = scmp.lt.s32.totalorder %s19_s14, %s19_s14 }
   0x4   :  { %p216_p2 = scmp.lt.s32.totalorder %s210_s18, %s210_s18 }
   0x6   :  { %p217_p3 = por %p216_p2, %p215_p1 }
   0x8   :  { %p218_p4 = pnand %p217_p3, %p211_p0 }
   0xa   :  { %221 = shalt.err (!%p218_p4)
}
   0xb   :  { %s238_s19 = smov [#allocation2]   ;;  %s222_s20 = scalar_lea.vmem %s29_s17, 16 }
   0xc   :  { %21 = dma.vmem_to_smem %s19_s14, 64, %s238_s19, [#allocation3]  }
   0xd   :  { %p223_p5 = scmp.ne.s32.totalorder %s29_s17, %s222_s20  ;;  %p227_p6 = scmp.lt.s32.totalorder %s29_s17, %s29_s17 }
   0xe   :  { %p228_p7 = scmp.lt.s32.totalorder %s222_s20, %s222_s20 }
  0x10   :  { %p229_p8 = por %p228_p7, %p227_p6 }
  0x12   :  { %p230_p9 = pnand %p229_p8, %p223_p5 }
  0x14   :  { %233 = shalt.err (!%p230_p9)
}
  0x15   :  { %s239_s1 = smov [#allocation4]  }
  0x16   :  { %31 = dma.vmem_to_smem %s29_s17, 16, %s239_s1, [#allocation5]  }
  0x17   :  { %234 = dma.done.wait [#allocation3], 64  }
  0x18   :  { %235 = vsyncadd [#allocation3], 4294967232 }
  0x19   :  { %236 = dma.done.wait [#allocation5], 16  }
  0x1a   :  { %237 = vsyncadd [#allocation5], 4294967280 }
  0x1b   :  { %38 = sfence }
  0x1c   :  { %s42_s2 = sld [smem:[#allocation2]]  ;;  %v39_v0 = vld [vmem:[%s405_s0] ss:$4 sm:$0x3]  ;;  %v80_v17 = vlaneseq }
  0x1d   :  { %s172_s21 = sld [smem:[#allocation2 + $0x1]]  ;;  %v170_v1 = vld [vmem:[%s405_s0 + $0x1] ss:$4 sm:$0x3] }
  0x1e   :  { %s175_s22 = sld [smem:[#allocation2 + $0x2]]  ;;  %v169_v2 = vld [vmem:[%s405_s0 + $0x8] ss:$4 sm:$0x3]  ;;  %vm318_vm0 = vcmp.lt.s32.totalorder %v80_v17, 256 }
  0x1f   :  { %s178_s25 = sld [smem:[#allocation2 + $0x3]]  ;;  %v171_v3 = vld [vmem:[%s405_s0 + $0x9] ss:$4 sm:$0x3] }
  0x20   :  { %s275_s30 = sld [smem:[#allocation4]]  ;;  %v173_v5 = vld [vmem:[%s405_s0 + $0x2] ss:$4 sm:$0x3] }
  0x21   :  { %v174_v6 = vld [vmem:[%s405_s0 + $0xa] ss:$4 sm:$0x3]  ;;  %v176_v9 = vld [vmem:[%s405_s0 + $0x3] ss:$4 sm:$0x3] }
  0x22   :  { %v43_v4 = vstv %s42_s2  ;;  %s289_s12 = sld [smem:[#allocation2 + $0x80]]  ;;  %v177_v14 = vld [vmem:[%s405_s0 + $0xb] ss:$4 sm:$0x3] }
  0x23   :  { %v44_v7 = vmul.f32 %v43_v4, %v39_v0  ;;  %v51_v8 = vstv %s172_s21  ;;  %v45_v10 = vmul.f32 %v169_v2, %v43_v4  ;;  %s294_s15 = sld [smem:[#allocation2 + $0x81]]  ;;  %v87_v19 = vld [vmem:[%s405_s0] ss:$4 sm:$0x3] }
  0x24   :  { %v52_v11 = vmul.f32 %v170_v1, %v51_v8  ;;  %v61_v12 = vstv %s175_s22  ;;  %v53_v13 = vmul.f32 %v171_v3, %v51_v8  ;;  %s299_s18 = sld [smem:[#allocation2 + $0x82]]  ;;  %v182_v23 = vld [vmem:[%s405_s0 + $0x1] ss:$4 sm:$0x3] }
  0x25   :  { %v62_v15 = vmul.f32 %v173_v5, %v61_v12  ;;  %v71_v16 = vstv %s178_s25  ;;  %v63_v18 = vmul.f32 %v174_v6, %v61_v12  ;;  %s304_s1 = sld [smem:[#allocation2 + $0x83]]  ;;  %v185_v25 = vld [vmem:[%s405_s0 + $0x2] ss:$4 sm:$0x3] }
  0x26   :  { %v54_v20 = vadd.f32 %v52_v11, %v44_v7  ;;  %v72_v21 = vmul.f32 %v176_v9, %v71_v16  ;;  %v55_v22 = vadd.f32 %v53_v13, %v45_v10  ;;  %v73_v24 = vmul.f32 %v177_v14, %v71_v16  ;;  %s309_s22 = sld [smem:[#allocation4 + $0x1]]  ;;  %v180_v28 = vld [vmem:[%s405_s0 + $0x8] ss:$4 sm:$0x3] }
  0x27   :  { %v183_v29 = vld [vmem:[%s405_s0 + $0x9] ss:$4 sm:$0x3]  ;;  %v77_v30 = vstv %s275_s30  ;;  %v188_v33 = vld [vmem:[%s405_s0 + $0x3] ss:$4 sm:$0x3] }
  0x28   :  { %v64_v26 = vadd.f32 %v62_v15, %v54_v20  ;;  %v65_v27 = vadd.f32 %v63_v18, %v55_v22  ;;  %v90_v32 = vstv %s289_s12  ;;  %s326_s29 = sld [smem:[#allocation2 + $0x100]]  ;;  %v186_v38 = vld [vmem:[%s405_s0 + $0xa] ss:$4 sm:$0x3] }
  0x29   :  { %v91_v36 = vmul.f32 %v90_v32, %v87_v19  ;;  %v96_v37 = vstv %s294_s15  ;;  %s332_s30 = sld [smem:[#allocation2 + $0x101]]  ;;  %v92_v41 = vmul.f32 %v180_v28, %v90_v32  ;;  %v189_v43 = vld [vmem:[%s405_s0 + $0xb] ss:$4 sm:$0x3] }
  0x2a   :  { %v74_v34 = vadd.f32 %v72_v21, %v64_v26  ;;  %v75_v35 = vadd.f32 %v73_v24, %v65_v27  ;;  %v97_v39 = vmul.f32 %v182_v23, %v96_v37  ;;  %v104_v40 = vstv %s299_s18  ;;  %s338_s8 = sld [smem:[#allocation2 + $0x102]]  ;;  %v125_v48 = vld [vmem:[%s405_s0] ss:$4 sm:$0x3] }
  0x2b   :  { %v98_v42 = vmul.f32 %v183_v29, %v96_v37  ;;  %v105_v46 = vmul.f32 %v185_v25, %v104_v40  ;;  %v112_v47 = vstv %s304_s1  ;;  %s344_s11 = sld [smem:[#allocation2 + $0x103]]  ;;  %v196_v52 = vld [vmem:[%s405_s0 + $0x1] ss:$4 sm:$0x3]  ;;  %v106_v54 = vmul.f32 %v186_v38, %v104_v40 }
  0x2c   :  { %v78_v44 = vadd.f32 %v77_v30, %v74_v34  ;;  %v79_v45 = vadd.f32 %v77_v30, %v75_v35  ;;  %v99_v49 = vadd.f32 %v97_v39, %v91_v36  ;;  %v113_v50 = vmul.f32 %v188_v33, %v112_v47  ;;  %v194_v53 = vld [vmem:[%s405_s0 + $0x8] ss:$4 sm:$0x3]  ;;  %s362_s20 = sld [smem:[#allocation4 + $0x2]] }
  0x2d   :  { %v100_v51 = vadd.f32 %v98_v42, %v92_v41  ;;  %v114_v55 = vmul.f32 %v189_v43, %v112_v47  ;;  %v197_v56 = vld [vmem:[%s405_s0 + $0x9] ss:$4 sm:$0x3]  ;;  %v118_v58 = vstv %s309_s22  ;;  %v199_v60 = vld [vmem:[%s405_s0 + $0x2] ss:$4 sm:$0x3] }
  0x2e   :  { %84 = vst.msk [vmem:[%s408_s3] ss:$4 sm:$0x3] %vm318_vm0, %v78_v44  ;;  %179 = vst.msk [vmem:[%s408_s3 + $0x8] ss:$4 sm:$0x3] %vm318_vm0, %v79_v45  ;;  %v107_v57 = vadd.f32 %v105_v46, %v99_v49  ;;  %v128_v59 = vstv %s326_s29 }
  0x2f   :  { %v200_v61 = vld [vmem:[%s405_s0 + $0xa] ss:$4 sm:$0x3]  ;;  %v108_v62 = vadd.f32 %v106_v54, %v100_v51  ;;  %v129_v63 = vmul.f32 %v128_v59, %v125_v48  ;;  %v134_v0 = vstv %s332_s30  ;;  %v202_v1 = vld [vmem:[%s405_s0 + $0x3] ss:$4 sm:$0x3]  ;;  %v130_v2 = vmul.f32 %v194_v53, %v128_v59 }
  0x30   :  { %v115_v3 = vadd.f32 %v113_v50, %v107_v57  ;;  %v135_v4 = vmul.f32 %v196_v52, %v134_v0  ;;  %v142_v5 = vstv %s338_s8  ;;  %v136_v6 = vmul.f32 %v197_v56, %v134_v0  ;;  %v203_v7 = vld [vmem:[%s405_s0 + $0xb] ss:$4 sm:$0x3] }
  0x31   :  { %v116_v8 = vadd.f32 %v114_v55, %v108_v62  ;;  %v143_v9 = vmul.f32 %v199_v60, %v142_v5  ;;  %v150_v10 = vstv %s344_s11  ;;  %v144_v11 = vmul.f32 %v200_v61, %v142_v5 }
  0x32   :  { %v119_v12 = vadd.f32 %v118_v58, %v115_v3  ;;  %v137_v13 = vadd.f32 %v135_v4, %v129_v63  ;;  %v151_v14 = vmul.f32 %v202_v1, %v150_v10  ;;  %v138_v16 = vadd.f32 %v136_v6, %v130_v2 }
  0x33   :  { %v120_v15 = vadd.f32 %v118_v58, %v116_v8  ;;  %v152_v17 = vmul.f32 %v203_v7, %v150_v10  ;;  %v156_v19 = vstv %s362_s20 }
  0x34   :  { %192 = vst.msk [vmem:[%s408_s3 + $0x1] ss:$4 sm:$0x3] %vm318_vm0, %v119_v12  ;;  %v145_v18 = vadd.f32 %v143_v9, %v137_v13  ;;  %v146_v20 = vadd.f32 %v144_v11, %v138_v16 }
  0x35   :  { %193 = vst.msk [vmem:[%s408_s3 + $0x9] ss:$4 sm:$0x3] %vm318_vm0, %v120_v15 }
  0x36   :  { %v153_v21 = vadd.f32 %v151_v14, %v145_v18  ;;  %v154_v22 = vadd.f32 %v152_v17, %v146_v20 }
  0x38   :  { %v157_v23 = vadd.f32 %v156_v19, %v153_v21  ;;  %v158_v24 = vadd.f32 %v156_v19, %v154_v22 }
  0x3a   :  { %206 = vst.msk [vmem:[%s408_s3 + $0x2] ss:$4 sm:$0x3] %vm318_vm0, %v157_v23  ;;  %207 = vst.msk [vmem:[%s408_s3 + $0xa] ss:$4 sm:$0x3] %vm318_vm0, %v158_v24 }
  0x3b   :  { %167 = vsyncpa [#allocation3], 1 }
  0x3c   :  { %168 = vsyncpa [#allocation5], 1 }

</bundles_post_ra>
